<compile_context>
chip_gen: v7x
topology: tpu7x:2x2x1
jax: 0.10.0
libtpu: 0.0.40
codegen_flags: <defaults>
</compile_context>

<pallas_src>
from functools import partial

import numpy as np
import jax
import jax.numpy as jnp
from jax import lax
from jax.experimental import pallas as pl
from jax.experimental.pallas import tpu as pltpu

LRELU_SLOPE = 0.2
BN_EPS = 1e-5


def _vmem_spec():
    return pl.BlockSpec(memory_space=pltpu.MemorySpace.VMEM)


def _leaky_relu(x):
    # max(x, 0.2*x) == LeakyReLU(0.2) for all x; single VPU max instead of cmp+sel.
    return jnp.maximum(x, LRELU_SLOPE * x)


# ------------------------------ fused kernel ------------------------------- #

def fused_disc_kernel(p_a_ref, w_down_ref, gamma_ref, beta_ref,
                      e_ref, w_proj_ref, b_proj_ref, w_cls_ref,
                      o_ref, *, ow_a, ksize_b, inv_sqrt_cmap):
    """Full SingleDiscCond forward, all operands VMEM-resident (single call).

      p_a_ref  : [n_a, kh*kw*nc]   im2col rows of padded input (conv-A taps)
      w_down   : [kh*kw*nc, ndf]   gamma/beta : [1, ndf]
      e_ref    : [B, emb_dim]      gathered embedding rows
      w_proj   : [emb_dim, cmap]   b_proj : [1, cmap]
      w_cls    : [kh*kw*ndf, cmap]
      o_ref    : [B, n_a]          lane-dense; valid 5x5 entries picked in wrapper
    """
    # --- DownBlock: conv-as-matmul + BatchNorm2d + LeakyReLU ------------------
    # Batch stats are exact only because the full row dim (B*OH*OW) is resident
    # in this single invocation (no grid over rows).  Biased variance matches
    # PyTorch BN training normalization.
    conv = jnp.dot(p_a_ref[...], w_down_ref[...],
                   preferred_element_type=jnp.float32)            # [n_a, ndf]
    mean = jnp.mean(conv, axis=0, keepdims=True)
    var = jnp.mean(jnp.square(conv - mean), axis=0, keepdims=True)
    h = (conv - mean) * lax.rsqrt(var + BN_EPS) * gamma_ref[...] + beta_ref[...]
    h = _leaky_relu(h)                                            # [n_a, ndf]
    n_a, ndf = h.shape

    # --- cmap = LeakyReLU(Linear(embedding row)) ------------------------------
    cm = jnp.dot(e_ref[...], w_proj_ref[...],
                 preferred_element_type=jnp.float32) + b_proj_ref[...]
    cm = _leaky_relu(cm)                                          # [B, cmap]

    # --- fold conditioning into the cls-conv weights --------------------------
    # w_eff[b, (i,j,c)] = sum_d cm[b,d] * w_cls[(i,j,c), d]
    w_eff = lax.dot_general(cm, w_cls_ref[...], (((1,), (1,)), ((), ())),
                            preferred_element_type=jnp.float32)   # [B, k*k*ndf]

    # --- in-kernel im2col for the cls conv (k x k, stride 1, valid) -----------
    # Row r = b*OH*OW + y*OW + x needs h row r + (i*OW + j) for tap (i, j).
    # For valid outputs (y, x <= OH-k) the shifted index never crosses a batch
    # block; invalid rows produce garbage that the wrapper discards.
    max_off = (ksize_b - 1) * ow_a + (ksize_b - 1)
    pad_rows = ((max_off + 7) // 8) * 8
    hpad = jnp.concatenate(
        [h, jnp.zeros((pad_rows, ndf), jnp.float32)], axis=0)     # [n_a+pad, ndf]
    pieces = []
    for i in range(ksize_b):
        for j in range(ksize_b):
            off = i * ow_a + j
            pieces.append(hpad[off:off + n_a, :])                 # [n_a, ndf]
    pbig = jnp.concatenate(pieces, axis=1)                        # [n_a, k*k*ndf]

    # --- out[b, r] = (1/sqrt(cmap)) * sum_k w_eff[b,k] * pbig[r,k] -------------
    # Lane-dense [B, n_a] result -> single unmasked store.
    out = lax.dot_general(w_eff, pbig, (((1,), (1,)), ((), ())),
                          preferred_element_type=jnp.float32)     # [B, n_a]
    o_ref[...] = out * inv_sqrt_cmap


# ------------------------------- JAX glue ----------------------------------- #

def extract_patches(x_nhwc, ksize, stride, pad):
    """im2col: NHWC -> [B, OH, OW, ksize*ksize*C] (kernel-row-major, C innermost)."""
    if pad:
        x_nhwc = jnp.pad(x_nhwc, ((0, 0), (pad, pad), (pad, pad), (0, 0)))
    B, H, W, C = x_nhwc.shape
    oh = (H - ksize) // stride + 1
    ow = (W - ksize) // stride + 1
    pieces = []
    for i in range(ksize):
        for j in range(ksize):
            pieces.append(
                x_nhwc[:, i:i + stride * oh:stride, j:j + stride * ow:stride, :])
    p = jnp.stack(pieces, axis=3)                  # [B, oh, ow, k*k, C]
    return p.reshape(B, oh, ow, ksize * ksize * C), oh, ow


def init_params(key, nc=4, ndf=32, c_dim=10, cmap_dim=64, embedding_dim=32):
    ks = jax.random.split(key, 7)
    return {
        "w_down":  0.10 * jax.random.normal(ks[0], (4, 4, nc, ndf), jnp.float32),        # HWIO
        "bn_gamma": 1.0 + 0.1 * jax.random.normal(ks[1], (1, ndf), jnp.float32),
        "bn_beta":  0.10 * jax.random.normal(ks[2], (1, ndf), jnp.float32),
        "w_cls":   0.05 * jax.random.normal(ks[3], (4, 4, ndf, cmap_dim), jnp.float32),   # HWIO
        "embed":          jax.random.normal(ks[4], (c_dim, embedding_dim), jnp.float32),
        "w_proj":  0.10 * jax.random.normal(ks[5], (embedding_dim, cmap_dim), jnp.float32),
        "b_proj":  0.10 * jax.random.normal(ks[6], (1, cmap_dim), jnp.float32),
    }


def single_disc_cond_forward(params, x_nchw, c_onehot, cmap_dim=64):
    B = x_nchw.shape[0]
    x = jnp.transpose(x_nchw, (0, 2, 3, 1))                       # NCHW -> NHWC

    # conv-A im2col stays as cheap XLA glue (stride-2 taps); conv-B im2col is in-kernel.
    p_a, oh_a, ow_a = extract_patches(x, 4, 2, 1)
    n_a, kdim_a = B * oh_a * ow_a, p_a.shape[-1]
    ndf = params["w_down"].shape[-1]

    # embedding lookup (argmax + gather) stays as XLA glue.
    idx = jnp.argmax(c_onehot, axis=1)
    e = jnp.take(params["embed"], idx, axis=0)                    # [B, emb_dim]

    ksize_b = params["w_cls"].shape[0]
    kdim_b = ksize_b * ksize_b * ndf

    out_all = pl.pallas_call(
        partial(fused_disc_kernel, ow_a=ow_a, ksize_b=ksize_b,
                inv_sqrt_cmap=float(1.0 / np.sqrt(cmap_dim))),
        out_shape=jax.ShapeDtypeStruct((B, n_a), jnp.float32),
        in_specs=[_vmem_spec()] * 8,
        out_specs=_vmem_spec(),
    )(p_a.reshape(n_a, kdim_a),
      params["w_down"].reshape(kdim_a, ndf),
      params["bn_gamma"], params["bn_beta"],
      e, params["w_proj"], params["b_proj"],
      params["w_cls"].reshape(kdim_b, cmap_dim))

    # Select valid cls-conv outputs (y, x in [0, OH-k]) for each batch element:
    # out_all[b, b*per_img + ...] -> diagonal of the [B, B, OH, OW] cross.
    oh_b = oh_a - ksize_b + 1
    ow_b = ow_a - ksize_b + 1
    bidx = jnp.arange(B)
    maps = out_all.reshape(B, B, oh_a, ow_a)[bidx, bidx]          # [B, OH, OW]
    return maps[:, :oh_b, :ow_b][:, None, :, :]                   # NCHW [B,1,5,5]


def reference_forward(params, x_nchw, c_onehot, cmap_dim=64):
    """Pure-JAX reference (no Pallas) for correctness checking."""
    x = jnp.transpose(x_nchw, (0, 2, 3, 1))
    dn = ("NHWC", "HWIO", "NHWC")
    h = lax.conv_general_dilated(x, params["w_down"], (2, 2),
                                 ((1, 1), (1, 1)), dimension_numbers=dn)
    mean = h.mean(axis=(0, 1, 2))
    var = jnp.square(h - mean).mean(axis=(0, 1, 2))
    h = (h - mean) * lax.rsqrt(var + BN_EPS) * params["bn_gamma"][0] + params["bn_beta"][0]
    h = jnp.where(h >= 0.0, h, LRELU_SLOPE * h)
    out = lax.conv_general_dilated(h, params["w_cls"], (1, 1),
                                   "VALID", dimension_numbers=dn)
    idx = jnp.argmax(c_onehot, axis=1)
    cm = jnp.take(params["embed"], idx, axis=0) @ params["w_proj"] + params["b_proj"][0]
    cm = jnp.where(cm >= 0.0, cm, LRELU_SLOPE * cm)
    o = (out * cm[:, None, None, :]).sum(-1) * (1.0 / np.sqrt(cmap_dim))
    return o[:, None, :, :]


if __name__ == "__main__":
    key = jax.random.PRNGKey(0)
    k_x, k_c, k_p = jax.random.split(key, 3)

    B, nc, start_sz, c_dim = 2, 4, 16, 10
    x = jax.random.normal(k_x, (B, nc, start_sz, start_sz), jnp.float32)   # NCHW
    labels = jax.random.randint(k_c, (B,), 0, c_dim)
    c = jax.nn.one_hot(labels, c_dim, dtype=jnp.float32)                   # [B, c_dim]

    params = init_params(k_p, nc=nc, ndf=32, c_dim=c_dim,
                         cmap_dim=64, embedding_dim=32)

    out = jax.jit(single_disc_cond_forward)(params, x, c)
    out = jax.block_until_ready(out)
    assert out.shape == (B, 1, 5, 5), out.shape

    ref = reference_forward(params, x, c)
    np.testing.assert_allclose(np.asarray(out), np.asarray(ref),
                               rtol=2e-3, atol=2e-3)
    print("KERNEL_OK")
</pallas_src>

<mosaic_0001>
module attributes {stable_mosaic.version = 11 : i64} {
  func.func @fused_disc_kernel(%arg0: memref<128x64xf32, #tpu.memory_space<vmem>>, %arg1: memref<64x32xf32, #tpu.memory_space<vmem>>, %arg2: memref<1x32xf32, #tpu.memory_space<vmem>>, %arg3: memref<1x32xf32, #tpu.memory_space<vmem>>, %arg4: memref<2x32xf32, #tpu.memory_space<vmem>>, %arg5: memref<32x64xf32, #tpu.memory_space<vmem>>, %arg6: memref<1x64xf32, #tpu.memory_space<vmem>>, %arg7: memref<512x64xf32, #tpu.memory_space<vmem>>, %arg8: memref<2x128xf32, #tpu.memory_space<vmem>>) attributes {dimension_semantics = [], scalar_prefetch = 0 : i64, scratch_operands = 0 : i64, tpu.core_type = #tpu.core_type<tc>} {
    %c0 = arith.constant 0 : index
    %c0_0 = arith.constant 0 : index
    %0 = vector.load %arg0[%c0, %c0_0] : memref<128x64xf32, #tpu.memory_space<vmem>>, vector<128x64xf32>
    %c0_1 = arith.constant 0 : index
    %c0_2 = arith.constant 0 : index
    %1 = vector.load %arg1[%c0_1, %c0_2] : memref<64x32xf32, #tpu.memory_space<vmem>>, vector<64x32xf32>
    %cst = arith.constant dense<0.000000e+00> : vector<128x32xf32>
    %2 = tpu.matmul %0, %1, %cst {dimension_numbers = #tpu.dot_dimension_numbers<[1], [0], [0], [1], [0, 0, 1, 1], [], []>} : vector<128x64xf32>, vector<64x32xf32>, vector<128x32xf32> -> vector<128x32xf32>
    %cst_3 = arith.constant dense<0.000000e+00> : vector<32xf32>
    %3 = vector.multi_reduction <add>, %2, %cst_3 [0] : vector<128x32xf32> to vector<32xf32>
    %4 = vector.shape_cast %3 : vector<32xf32> to vector<1x32xf32>
    %cst_4 = arith.constant 1.280000e+02 : f32
    %5 = vector.broadcast %cst_4 : f32 to vector<1x32xf32>
    %6 = arith.divf %4, %5 : vector<1x32xf32>
    %7 = vector.broadcast %6 : vector<1x32xf32> to vector<128x32xf32>
    %8 = arith.subf %2, %7 : vector<128x32xf32>
    %9 = arith.mulf %8, %8 : vector<128x32xf32>
    %cst_5 = arith.constant dense<0.000000e+00> : vector<32xf32>
    %10 = vector.multi_reduction <add>, %9, %cst_5 [0] : vector<128x32xf32> to vector<32xf32>
    %11 = vector.shape_cast %10 : vector<32xf32> to vector<1x32xf32>
    %cst_6 = arith.constant 1.280000e+02 : f32
    %12 = vector.broadcast %cst_6 : f32 to vector<1x32xf32>
    %13 = arith.divf %11, %12 : vector<1x32xf32>
    %14 = vector.broadcast %6 : vector<1x32xf32> to vector<128x32xf32>
    %15 = arith.subf %2, %14 : vector<128x32xf32>
    %cst_7 = arith.constant 9.99999974E-6 : f32
    %16 = vector.broadcast %cst_7 : f32 to vector<1x32xf32>
    %17 = arith.addf %13, %16 : vector<1x32xf32>
    %18 = math.rsqrt %17 : vector<1x32xf32>
    %19 = vector.broadcast %18 : vector<1x32xf32> to vector<128x32xf32>
    %20 = arith.mulf %15, %19 : vector<128x32xf32>
    %c0_8 = arith.constant 0 : index
    %c0_9 = arith.constant 0 : index
    %21 = vector.load %arg2[%c0_8, %c0_9] : memref<1x32xf32, #tpu.memory_space<vmem>>, vector<1x32xf32>
    %22 = vector.broadcast %21 : vector<1x32xf32> to vector<128x32xf32>
    %23 = arith.mulf %20, %22 : vector<128x32xf32>
    %c0_10 = arith.constant 0 : index
    %c0_11 = arith.constant 0 : index
    %24 = vector.load %arg3[%c0_10, %c0_11] : memref<1x32xf32, #tpu.memory_space<vmem>>, vector<1x32xf32>
    %25 = vector.broadcast %24 : vector<1x32xf32> to vector<128x32xf32>
    %26 = arith.addf %23, %25 : vector<128x32xf32>
    %cst_12 = arith.constant 2.000000e-01 : f32
    %27 = vector.broadcast %cst_12 : f32 to vector<128x32xf32>
    %28 = arith.mulf %27, %26 : vector<128x32xf32>
    %29 = arith.maximumf %26, %28 : vector<128x32xf32>
    %c0_13 = arith.constant 0 : index
    %c0_14 = arith.constant 0 : index
    %30 = vector.load %arg4[%c0_13, %c0_14] : memref<2x32xf32, #tpu.memory_space<vmem>>, vector<2x32xf32>
    %c0_15 = arith.constant 0 : index
    %c0_16 = arith.constant 0 : index
    %31 = vector.load %arg5[%c0_15, %c0_16] : memref<32x64xf32, #tpu.memory_space<vmem>>, vector<32x64xf32>
    %cst_17 = arith.constant dense<0.000000e+00> : vector<2x64xf32>
    %32 = tpu.matmul %30, %31, %cst_17 {dimension_numbers = #tpu.dot_dimension_numbers<[1], [0], [0], [1], [0, 0, 1, 1], [], []>} : vector<2x32xf32>, vector<32x64xf32>, vector<2x64xf32> -> vector<2x64xf32>
    %c0_18 = arith.constant 0 : index
    %c0_19 = arith.constant 0 : index
    %33 = vector.load %arg6[%c0_18, %c0_19] : memref<1x64xf32, #tpu.memory_space<vmem>>, vector<1x64xf32>
    %34 = vector.broadcast %33 : vector<1x64xf32> to vector<2x64xf32>
    %35 = arith.addf %32, %34 : vector<2x64xf32>
    %cst_20 = arith.constant 2.000000e-01 : f32
    %36 = vector.broadcast %cst_20 : f32 to vector<2x64xf32>
    %37 = arith.mulf %36, %35 : vector<2x64xf32>
    %38 = arith.maximumf %35, %37 : vector<2x64xf32>
    %c0_21 = arith.constant 0 : index
    %c0_22 = arith.constant 0 : index
    %39 = vector.load %arg7[%c0_21, %c0_22] : memref<512x64xf32, #tpu.memory_space<vmem>>, vector<512x64xf32>
    %cst_23 = arith.constant dense<0.000000e+00> : vector<2x512xf32>
    %40 = tpu.matmul %38, %39, %cst_23 {dimension_numbers = #tpu.dot_dimension_numbers<[1], [1], [0], [0], [0, 0, 1, 0], [], []>} : vector<2x64xf32>, vector<512x64xf32>, vector<2x512xf32> -> vector<2x512xf32>
    %cst_24 = arith.constant 0.000000e+00 : f32
    %41 = vector.broadcast %cst_24 : f32 to vector<32x32xf32>
    %42 = tpu.concatenate %29, %41 in 0 : vector<128x32xf32>, vector<32x32xf32> -> vector<160x32xf32>
    %43 = vector.extract_strided_slice %42 {offsets = [0, 0], sizes = [128, 32], strides = [1, 1]} : vector<160x32xf32> to vector<128x32xf32>
    %44 = vector.extract_strided_slice %42 {offsets = [1, 0], sizes = [128, 32], strides = [1, 1]} : vector<160x32xf32> to vector<128x32xf32>
    %45 = vector.extract_strided_slice %42 {offsets = [2, 0], sizes = [128, 32], strides = [1, 1]} : vector<160x32xf32> to vector<128x32xf32>
    %46 = vector.extract_strided_slice %42 {offsets = [3, 0], sizes = [128, 32], strides = [1, 1]} : vector<160x32xf32> to vector<128x32xf32>
    %47 = vector.extract_strided_slice %42 {offsets = [8, 0], sizes = [128, 32], strides = [1, 1]} : vector<160x32xf32> to vector<128x32xf32>
    %48 = vector.extract_strided_slice %42 {offsets = [9, 0], sizes = [128, 32], strides = [1, 1]} : vector<160x32xf32> to vector<128x32xf32>
    %49 = vector.extract_strided_slice %42 {offsets = [10, 0], sizes = [128, 32], strides = [1, 1]} : vector<160x32xf32> to vector<128x32xf32>
    %50 = vector.extract_strided_slice %42 {offsets = [11, 0], sizes = [128, 32], strides = [1, 1]} : vector<160x32xf32> to vector<128x32xf32>
    %51 = vector.extract_strided_slice %42 {offsets = [16, 0], sizes = [128, 32], strides = [1, 1]} : vector<160x32xf32> to vector<128x32xf32>
    %52 = vector.extract_strided_slice %42 {offsets = [17, 0], sizes = [128, 32], strides = [1, 1]} : vector<160x32xf32> to vector<128x32xf32>
    %53 = vector.extract_strided_slice %42 {offsets = [18, 0], sizes = [128, 32], strides = [1, 1]} : vector<160x32xf32> to vector<128x32xf32>
    %54 = vector.extract_strided_slice %42 {offsets = [19, 0], sizes = [128, 32], strides = [1, 1]} : vector<160x32xf32> to vector<128x32xf32>
    %55 = vector.extract_strided_slice %42 {offsets = [24, 0], sizes = [128, 32], strides = [1, 1]} : vector<160x32xf32> to vector<128x32xf32>
    %56 = vector.extract_strided_slice %42 {offsets = [25, 0], sizes = [128, 32], strides = [1, 1]} : vector<160x32xf32> to vector<128x32xf32>
    %57 = vector.extract_strided_slice %42 {offsets = [26, 0], sizes = [128, 32], strides = [1, 1]} : vector<160x32xf32> to vector<128x32xf32>
    %58 = vector.extract_strided_slice %42 {offsets = [27, 0], sizes = [128, 32], strides = [1, 1]} : vector<160x32xf32> to vector<128x32xf32>
    %59 = tpu.concatenate %43, %44, %45, %46, %47, %48, %49, %50, %51, %52, %53, %54, %55, %56, %57, %58 in 1 : vector<128x32xf32>, vector<128x32xf32>, vector<128x32xf32>, vector<128x32xf32>, vector<128x32xf32>, vector<128x32xf32>, vector<128x32xf32>, vector<128x32xf32>, vector<128x32xf32>, vector<128x32xf32>, vector<128x32xf32>, vector<128x32xf32>, vector<128x32xf32>, vector<128x32xf32>, vector<128x32xf32>, vector<128x32xf32> -> vector<128x512xf32>
    %cst_25 = arith.constant dense<0.000000e+00> : vector<2x128xf32>
    %60 = tpu.matmul %40, %59, %cst_25 {dimension_numbers = #tpu.dot_dimension_numbers<[1], [1], [0], [0], [0, 0, 1, 0], [], []>} : vector<2x512xf32>, vector<128x512xf32>, vector<2x128xf32> -> vector<2x128xf32>
    %cst_26 = arith.constant 1.250000e-01 : f32
    %61 = vector.broadcast %cst_26 : f32 to vector<2x128xf32>
    %62 = arith.mulf %60, %61 : vector<2x128xf32>
    %c0_27 = arith.constant 0 : index
    %c0_28 = arith.constant 0 : index
    %63 = vector.load %arg8[%c0_27, %c0_28] : memref<2x128xf32, #tpu.memory_space<vmem>>, vector<2x128xf32>
    tpu.vector_store %arg8[%c0_27, %c0_28], %62 {strides = array<i32>} : memref<2x128xf32, #tpu.memory_space<vmem>>, vector<2x128xf32>,
    return
  }
}

</mosaic_0001>

<bundles_post_ra>
// kernel: single_disc_cond_forward.1
= control target key start
LH: loop header
LB: loop body
LE: loop exit
PB: predicated region body
PF: predicated region fallthrough
CT: control target
= control target key end

     0   :  { %vm53_vm0 = vcmask 523264   ;;  %v1960_v3 = vmov 0.0|0.0   ;;  %vm1961_vm1 = vmmov 0   ;;  %v1962_v4 = vmov 0.0   ;;  %s1965_s15 = smov 96   ;;  %s2897_s1 = inlined_call_operand.vmem [shape: f32[64,32], index: 1, kind: input, shape index: {}]   ;;  %s2898_s0 = inlined_call_operand.vmem [shape: f32[128,64], index: 0, kind: input, shape index: {}]   ;;  %s2899_s5 = inlined_call_operand.vmem [shape: f32[32,64], index: 5, kind: input, shape index: {}]   ;;  %s2900_s7 = inlined_call_operand.vmem [shape: f32[512,64], index: 7, kind: input, shape index: {}]   ;;  %s2901_s4 = inlined_call_operand.vmem [shape: f32[2,32], index: 4, kind: input, shape index: {}]   ;;  %s2902_s6 = inlined_call_operand.vmem [shape: f32[1,64], index: 6, kind: input, shape index: {}]   ;;  %s2903_s2 = inlined_call_operand.vmem [shape: f32[1,32], index: 2, kind: input, shape index: {}]   ;;  %s2904_s3 = inlined_call_operand.vmem [shape: f32[1,32], index: 3, kind: input, shape index: {}]   ;;  %s2905_s8 = inlined_call_operand.vmem [shape: f32[2,128], index: 8, kind: output, shape index: {}]  }
   0x1   :  { %v45_v0 = vld [vmem:[%s2897_s1] sm:$0xff]  ;;  %v46_v1 = vld [vmem:[%s2897_s1 + $0x8] sm:$0xff]  ;;  %v47_v2 = vld [vmem:[%s2897_s1 + $0x10] sm:$0xff]  ;;  %1664 = vmatprep.subr.bf16.mxu1 %v1960_v3  ;;  %1645 = vmatprep.mubr.msk.f32.mxu1 %vm1961_vm1, %v1962_v4  ;;  %vm247_vm2 = vcmask 261120   ;;  %vm1040_vm4 = vcmask 1045504   ;;  %vm958_vm5 = vcmask 1046528  }
   0x2   :  { %v1648_v5 = vpack.c.bf16 %v46_v1, %v45_v0  ;;  %v48_v6 = vld [vmem:[%s2897_s1 + $0x18] sm:$0xff]  ;;  %v49_v8 = vld [vmem:[%s2897_s1 + $0x20] sm:$0xff]  ;;  %v50_v9 = vld [vmem:[%s2897_s1 + $0x28] sm:$0xff]  ;;  %vm1122_vm6 = vcmask 1044480   ;;  %vm1248_vm7 = vcmask 785408  }
   0x3   :  { %v1652_v7 = vpack.c.bf16 %v48_v6, %v47_v2  ;;  %v29_v10 = vld [vmem:[%s2898_s0] sm:$0xff]  ;;  %v1656_v11 = vpack.c.bf16 %v50_v9, %v49_v8  ;;  %v51_v12 = vld [vmem:[%s2897_s1 + $0x30] sm:$0xff]  ;;  %v52_v13 = vld [vmem:[%s2897_s1 + $0x38] sm:$0xff] }
   0x4   :  { %1649 = vmatprep.subr.bf16.mxu0 %v1648_v5  ;;  %1613 = vmatprep.mubr.msk.f32.mxu0 %vm53_vm0, %v29_v10  ;;  %v454_v14 = vld [vmem:[%s2899_s5] sm:$0xff]  ;;  %v455_v15 = vld [vmem:[%s2899_s5 + $0x8] sm:$0xff]  ;;  %v456_v17 = vld [vmem:[%s2899_s5 + $0x10] sm:$0xff]  ;;  %v1660_v19 = vpack.c.bf16 %v52_v13, %v51_v12 }
   0x5   :  { %1651 = vmatpush3.bf16.msra.mxu0 %v1648_v5  ;;  %v1665_v16 = vpack.c.bf16 %v455_v15, %v454_v14  ;;  %v457_v18 = vld [vmem:[%s2899_s5 + $0x18] sm:$0xff]  ;;  %v556_v21 = vld [vmem:[%s2900_s7 + $0x80] sm:$0xff]  ;;  %v557_v22 = vld [vmem:[%s2900_s7 + $0x88] sm:$0xff] }
   0x6   :  { %1653 = vmatprep.subr.bf16.mxu0 %v1652_v7  ;;  %v1668_v20 = vpack.c.bf16 %v457_v18, %v456_v17  ;;  %v1670_v23 = vpack.c.bf16 %v557_v22, %v556_v21  ;;  %v453_v24 = vld [vmem:[%s2901_s4] sm:$0x3]  ;;  %vm2063_vm3 = vmpackc.low %vm53_vm0, %vm53_vm0  ;;  %v30_v26 = vld [vmem:[%s2898_s0 + $0x8] sm:$0xff] }
   0x7   :  { %1666 = vmatpush3.bf16.msra.mxu1 %v1665_v16  ;;  %v31_v27 = vld [vmem:[%s2898_s0 + $0x10] sm:$0xff]  ;;  %v540_v28 = vld [vmem:[%s2900_s7] sm:$0xff]  ;;  %v541_v29 = vld [vmem:[%s2900_s7 + $0x8] sm:$0xff] }
   0x8   :  { %1667 = vmatprep.subr.bf16.mxu1 %v1960_v3  ;;  %v558_v30 = vld [vmem:[%s2900_s7 + $0x90] sm:$0xff]  ;;  %v559_v31 = vld [vmem:[%s2900_s7 + $0x98] sm:$0xff]  ;;  %v33_v33 = vld [vmem:[%s2898_s0 + $0x20] sm:$0xff]  ;;  %v1673_v34 = vpack.c.bf16 %v541_v29, %v540_v28 }
   0x9   :  { %1655 = vmatpush3.bf16.msra.mxu0 %v1652_v7  ;;  %v32_v32 = vld [vmem:[%s2898_s0 + $0x18] sm:$0xff]  ;;  %v1676_v35 = vpack.c.bf16 %v559_v31, %v558_v30  ;;  %v34_v36 = vld [vmem:[%s2898_s0 + $0x28] sm:$0xff]  ;;  %v35_v37 = vld [vmem:[%s2898_s0 + $0x30] sm:$0xff] }
   0xa   :  { %1657 = vmatprep.subr.bf16.mxu0 %v1656_v11  ;;  %v542_v38 = vld [vmem:[%s2900_s7 + $0x10] sm:$0xff]  ;;  %v543_v39 = vld [vmem:[%s2900_s7 + $0x18] sm:$0xff]  ;;  %v560_v40 = vld [vmem:[%s2900_s7 + $0xa0] sm:$0xff] }
   0xb   :  { %1669 = vmatpush3.bf16.msra.mxu1 %v1668_v20  ;;  %v561_v41 = vld [vmem:[%s2900_s7 + $0xa8] sm:$0xff]  ;;  %v36_v42 = vld [vmem:[%s2898_s0 + $0x38] sm:$0xff]  ;;  %v37_v43 = vld [vmem:[%s2898_s0 + $0x40] sm:$0xff]  ;;  %v1679_v44 = vpack.c.bf16 %v543_v39, %v542_v38 }
   0xc   :  { %v1682_v45 = vpack.c.bf16 %v561_v41, %v560_v40  ;;  %v38_v46 = vld [vmem:[%s2898_s0 + $0x48] sm:$0xff]  ;;  %v39_v47 = vld [vmem:[%s2898_s0 + $0x50] sm:$0xff]  ;;  %v544_v48 = vld [vmem:[%s2900_s7 + $0x20] sm:$0xff] }
   0xd   :  { %1659 = vmatpush3.bf16.msra.mxu0 %v1656_v11  ;;  %v545_v49 = vld [vmem:[%s2900_s7 + $0x28] sm:$0xff]  ;;  %v562_v50 = vld [vmem:[%s2900_s7 + $0xb0] sm:$0xff]  ;;  %v563_v51 = vld [vmem:[%s2900_s7 + $0xb8] sm:$0xff] }
   0xe   :  { %1661 = vmatprep.subr.bf16.mxu0 %v1660_v19  ;;  %1646 = vmatmul.mubr.msk.f32.vlgmr.msra.gmra.mrb[0].mxu1 %vm247_vm2, %v453_v24  ;;  %v40_v52 = vld [vmem:[%s2898_s0 + $0x58] sm:$0xff]  ;;  %v41_v53 = vld [vmem:[%s2898_s0 + $0x60] sm:$0xff]  ;;  %v1685_v54 = vpack.c.bf16 %v545_v49, %v544_v48  ;;  %v1688_v55 = vpack.c.bf16 %v563_v51, %v562_v50  ;;  %v42_v56 = vld [vmem:[%s2898_s0 + $0x68] sm:$0xff] }
   0xf   :  { %v43_v57 = vld [vmem:[%s2898_s0 + $0x70] sm:$0xff]  ;;  %v547_v59 = vld [vmem:[%s2900_s7 + $0x38] sm:$0xff]  ;;  %v564_v62 = vld [vmem:[%s2900_s7 + $0xc0] sm:$0xff] }
  0x10   :  { %v546_v58 = vld [vmem:[%s2900_s7 + $0x30] sm:$0xff]  ;;  %v44_v60 = vld [vmem:[%s2898_s0 + $0x78] sm:$0xff]  ;;  %v565_v63 = vld [vmem:[%s2900_s7 + $0xc8] sm:$0xff] }
  0x11   :  { %1663 = vmatpush3.bf16.msra.mxu0 %v1660_v19  ;;  %v1691_v61 = vpack.c.bf16 %v547_v59, %v546_v58  ;;  %v1694_v0 = vpack.c.bf16 %v565_v63, %v564_v62  ;;  %v548_v1 = vld [vmem:[%s2900_s7 + $0x40] sm:$0xff]  ;;  %v549_v2 = vld [vmem:[%s2900_s7 + $0x48] sm:$0xff]  ;;  %v566_v5 = vld [vmem:[%s2900_s7 + $0xd0] sm:$0xff] }
  0x12   :  { %1672 = vmatprep.subr.msk.bf16.mxu0 %vm2063_vm3, %v1670_v23  ;;  %v1697_v3 = vpack.c.bf16 %v549_v2, %v548_v1  ;;  %v567_v6 = vld [vmem:[%s2900_s7 + $0xd8] sm:$0xff]  ;;  %v550_v8 = vld [vmem:[%s2900_s7 + $0x50] sm:$0xff]  ;;  %v568_v11 = vld [vmem:[%s2900_s7 + $0xe0] sm:$0xff] }
  0x13   :  { %v1700_v7 = vpack.c.bf16 %v567_v6, %v566_v5  ;;  %v551_v9 = vld [vmem:[%s2900_s7 + $0x58] sm:$0xff]  ;;  %v569_v12 = vld [vmem:[%s2900_s7 + $0xe8] sm:$0xff]  ;;  %v552_v14 = vld [vmem:[%s2900_s7 + $0x60] sm:$0xff] }
  0x14   :  { %1614 = vmatmul.mubr.msk.f32.vlgmr.msra.gmra.mrb[0].mxu0 %vm53_vm0, %v30_v26  ;;  %v1703_v10 = vpack.c.bf16 %v551_v9, %v550_v8  ;;  %v1706_v13 = vpack.c.bf16 %v569_v12, %v568_v11  ;;  %v553_v15 = vld [vmem:[%s2900_s7 + $0x68] sm:$0xff]  ;;  %v570_v17 = vld [vmem:[%s2900_s7 + $0xf0] sm:$0xff]  ;;  %v571_v18 = vld [vmem:[%s2900_s7 + $0xf8] sm:$0xff] }
  0x15   :  { %1616 = vmatprep.mubr.msk.f32.mxu0 %vm53_vm0, %v31_v27  ;;  %v1709_v16 = vpack.c.bf16 %v553_v15, %v552_v14  ;;  %v1712_v19 = vpack.c.bf16 %v571_v18, %v570_v17  ;;  %v554_v20 = vld [vmem:[%s2900_s7 + $0x70] sm:$0xff]  ;;  %v555_v21 = vld [vmem:[%s2900_s7 + $0x78] sm:$0xff]  ;;  %v588_v23 = vld [vmem:[%s2900_s7 + $0x180] sm:$0xff] }
  0x16   :  { %v1715_v22 = vpack.c.bf16 %v555_v21, %v554_v20  ;;  %v589_v24 = vld [vmem:[%s2900_s7 + $0x188] sm:$0xff]  ;;  %v1432_v27 = vld [vmem:[%s2902_s6] ss:$0 sm:$0xff]  ;;  %v591_v38 = vld [vmem:[%s2900_s7 + $0x198] sm:$0xff] }
  0x17   :  { %v1718_v26 = vpack.c.bf16 %v589_v24, %v588_v23  ;;  %v574_v50 = vld [vmem:[%s2900_s7 + $0x110] sm:$0xff]  ;;  %v575_v51 = vld [vmem:[%s2900_s7 + $0x118] sm:$0xff]  ;;  %v576_v5 = vld [vmem:[%s2900_s7 + $0x120] sm:$0xff] }
  0x18   :  { %1617 = vmatmul.mubr.msk.f32.gmra.mrb[2].mxu0 %vm53_vm0, %v32_v32  ;;  %v572_v32 = vld [vmem:[%s2900_s7 + $0x100] sm:$0xff]  ;;  %v1727_v58 = vpack.c.bf16 %v575_v51, %v574_v50  ;;  %v577_v6 = vld [vmem:[%s2900_s7 + $0x128] sm:$0xff]  ;;  %v594_v9 = vld [vmem:[%s2900_s7 + $0x1b0] sm:$0xff] }
  0x19   :  { %1619 = vmatprep.mubr.msk.f32.mxu0 %vm53_vm0, %v33_v33  ;;  %v573_v33 = vld [vmem:[%s2900_s7 + $0x108] sm:$0xff]  ;;  %v578_v23 = vld [vmem:[%s2900_s7 + $0x130] sm:$0xff]  ;;  %v579_v24 = vld [vmem:[%s2900_s7 + $0x138] sm:$0xff] }
  0x1a   :  { %1675 = vmatpush3.bf16.xpose.msk.msra.mxu0 %vm2063_vm3, %v1673_v34  ;;  %v598_v50 = vld [vmem:[%s2900_s7 + $0x1d0] sm:$0xff]  ;;  %v599_v51 = vld [vmem:[%s2900_s7 + $0x1d8] sm:$0xff] }
  0x1b   :  { %1678 = vmatprep.subr.msk.bf16.mxu0 %vm2063_vm3, %v1676_v35 }
  0x1c   :  { %1620 = vmatmul.mubr.msk.f32.gmra.mrb[4].mxu0 %vm53_vm0, %v34_v36 }
  0x1d   :  { %1622 = vmatprep.mubr.msk.f32.mxu0 %vm53_vm0, %v35_v37  ;;  %v590_v37 = vld [vmem:[%s2900_s7 + $0x190] sm:$0xff] }
  0x20   :  { %1623 = vmatmul.mubr.msk.f32.gmra.mrb[6].mxu0 %vm53_vm0, %v36_v42  ;;  %v1721_v42 = vpack.c.bf16 %v573_v33, %v572_v32  ;;  %v1739_v33 = vpack.c.bf16 %v579_v24, %v578_v23 }
  0x21   :  { %1625 = vmatprep.mubr.msk.f32.mxu0 %vm53_vm0, %v37_v43 }
  0x22   :  { %1681 = vmatpush3.bf16.xpose.msk.msra.mxu0 %vm2063_vm3, %v1679_v44  ;;  %v1724_v44 = vpack.c.bf16 %v591_v38, %v590_v37 }
  0x23   :  { %1684 = vmatprep.subr.msk.bf16.mxu0 %vm2063_vm3, %v1682_v45 }
  0x24   :  { %1626 = vmatmul.mubr.msk.f32.gmra.mrb[8].mxu0 %vm53_vm0, %v38_v46 }
  0x25   :  { %1628 = vmatprep.mubr.msk.f32.mxu0 %vm53_vm0, %v39_v47 }
  0x28   :  { %1629 = vmatmul.mubr.msk.f32.gmra.mrb[10].mxu0 %vm53_vm0, %v40_v52 }
  0x29   :  { %1631 = vmatprep.mubr.msk.f32.mxu0 %vm53_vm0, %v41_v53 }
  0x2a   :  { %1687 = vmatpush3.bf16.xpose.msk.msra.mxu0 %vm2063_vm3, %v1685_v54  ;;  %v592_v54 = vld [vmem:[%s2900_s7 + $0x1a0] sm:$0xff] }
  0x2b   :  { %1690 = vmatprep.subr.msk.bf16.mxu0 %vm2063_vm3, %v1688_v55  ;;  %v593_v55 = vld [vmem:[%s2900_s7 + $0x1a8] sm:$0xff] }
  0x2c   :  { %1632 = vmatmul.mubr.msk.f32.gmra.mrb[12].mxu0 %vm53_vm0, %v42_v56 }
  0x2d   :  { %1634 = vmatprep.mubr.msk.f32.mxu0 %vm53_vm0, %v43_v57 }
  0x30   :  { %1635 = vmatmul.mubr.msk.f32.gmra.mrb[14].mxu0 %vm53_vm0, %v44_v60 }
  0x32   :  { %1693 = vmatpush3.bf16.xpose.msk.msra.mxu0 %vm2063_vm3, %v1691_v61  ;;  %v1730_v61 = vpack.c.bf16 %v593_v55, %v592_v54  ;;  %v1748_v55 = vpack.c.bf16 %v599_v51, %v598_v50 }
  0x33   :  { %1696 = vmatprep.subr.msk.bf16.mxu0 %vm2063_vm3, %v1694_v0 }
  0x3a   :  { %1699 = vmatpush3.bf16.xpose.msk.msra.mxu0 %vm2063_vm3, %v1697_v3 }
  0x3b   :  { %1702 = vmatprep.subr.msk.bf16.mxu0 %vm2063_vm3, %v1700_v7 }
  0x42   :  { %1705 = vmatpush3.bf16.xpose.msk.msra.mxu0 %vm2063_vm3, %v1703_v10  ;;  %v595_v10 = vld [vmem:[%s2900_s7 + $0x1b8] sm:$0xff] }
  0x43   :  { %1708 = vmatprep.subr.msk.bf16.mxu0 %vm2063_vm3, %v1706_v13  ;;  %v1733_v13 = vpack.c.bf16 %v577_v6, %v576_v5  ;;  %v584_v6 = vld [vmem:[%s2900_s7 + $0x160] sm:$0xff] }
  0x4a   :  { %1711 = vmatpush3.bf16.xpose.msk.msra.mxu0 %vm2063_vm3, %v1709_v16  ;;  %v1736_v16 = vpack.c.bf16 %v595_v10, %v594_v9  ;;  %v585_v9 = vld [vmem:[%s2900_s7 + $0x168] sm:$0xff]  ;;  %v602_v10 = vld [vmem:[%s2900_s7 + $0x1f0] sm:$0xff] }
  0x4b   :  { %1714 = vmatprep.subr.msk.bf16.mxu0 %vm2063_vm3, %v1712_v19 }
  0x52   :  { %1717 = vmatpush3.bf16.xpose.msk.msra.mxu0 %vm2063_vm3, %v1715_v22 }
  0x53   :  { %1720 = vmatprep.subr.msk.bf16.mxu0 %vm2063_vm3, %v1718_v26 }
  0xe1   :  { %v534_v28 = vpop.f32.mrb[0].mxu1 }
  0xe2   :  { %v535_v29 = vadd.f32 %v1432_v27, %v534_v28  ;;  %v1647_v30 = vpop.f32.mrb[1].mxu1  ;;  %v596_v28 = vld [vmem:[%s2900_s7 + $0x1c0] sm:$0xff] }
  0xe4   :  { %v538_v36 = vmul.f32 0.2, %v535_v29 }
  0xe6   :  { %v2281_v41 = vmax.f32 %v535_v29, %v538_v36  ;;  %v597_v29 = vld [vmem:[%s2900_s7 + $0x1c8] sm:$0xff] }
  0xe7   :  { %v2261_v31 = vpop.f32.mrb[0].mxu0  ;;  %v1742_v37 = vpack.c.bf16 %v597_v29, %v596_v28 }
  0xe8   :  { %v249_v34 = vsel %vm247_vm2, %v2261_v31, 0.0  ;;  %v2271_v35 = vpop.f32.mrb[1].mxu0  ;;  %1561 = vmatprep.mubr.msk.f32.mxu0 %vm53_vm0, %v2281_v41 }
  0xe9   :  { %v248_v39 = vsel %vm247_vm2, %v2271_v35, 0.0  ;;  %1562 = vmatmul.mubr.msk.f32.vlgmr.msra.gmra.mrb[16].mxu0 %vm53_vm0, %v2281_v41 }
  0xea   :  { %v250_v40 = vadd.f32 %v249_v34, %v248_v39  ;;  %1723 = vmatpush3.bf16.xpose.msk.msra.mxu0 %vm2063_vm3, %v1721_v42  ;;  %1595 = vmatprep.mubr.msk.f32.mxu0 %vm53_vm0, %v2281_v41 }
  0xeb   :  { %v2283_v43 = vpop.f32.mrb[2].mxu0  ;;  %1726 = vmatprep.subr.msk.bf16.mxu0 %vm2063_vm3, %v1724_v44 }
  0xec   :  { %v2285_v45 = vpop.f32.mrb[3].mxu0  ;;  %v253_v48 = vsel %vm247_vm2, %v2283_v43, 0.0 }
  0xed   :  { %v251_v46 = vsel %vm247_vm2, %v2285_v45, 0.0 }
  0xee   :  { %v252_v47 = vadd.f32 %v251_v46, %v250_v40  ;;  %v580_v46 = vld [vmem:[%s2900_s7 + $0x140] sm:$0xff] }
  0xef   :  { %v2299_v49 = vpop.f32.mrb[4].mxu0 }
  0xf0   :  { %v2309_v52 = vpop.f32.mrb[5].mxu0  ;;  %v254_v53 = vadd.f32 %v253_v48, %v252_v47  ;;  %v257_v59 = vsel %vm247_vm2, %v2299_v49, 0.0  ;;  %v581_v47 = vld [vmem:[%s2900_s7 + $0x148] sm:$0xff] }
  0xf1   :  { %v255_v56 = vsel %vm247_vm2, %v2309_v52, 0.0  ;;  %v1745_v54 = vpack.c.bf16 %v581_v47, %v580_v46 }
  0xf2   :  { %v256_v57 = vadd.f32 %v255_v56, %v254_v53  ;;  %1729 = vmatpush3.bf16.xpose.msk.msra.mxu0 %vm2063_vm3, %v1727_v58  ;;  %v582_v58 = vld [vmem:[%s2900_s7 + $0x150] sm:$0xff] }
  0xf3   :  { %v2321_v60 = vpop.f32.mrb[6].mxu0  ;;  %1732 = vmatprep.subr.msk.bf16.mxu0 %vm2063_vm3, %v1730_v61 }
  0xf4   :  { %v2323_v62 = vpop.f32.mrb[7].mxu0  ;;  %v258_v63 = vadd.f32 %v257_v59, %v256_v57  ;;  %v261_v2 = vsel %vm247_vm2, %v2321_v60, 0.0  ;;  %v583_v59 = vld [vmem:[%s2900_s7 + $0x158] sm:$0xff] }
  0xf5   :  { %v259_v0 = vsel %vm247_vm2, %v2323_v62, 0.0 }
  0xf6   :  { %v260_v1 = vadd.f32 %v259_v0, %v258_v63  ;;  %v600_v63 = vld [vmem:[%s2900_s7 + $0x1e0] sm:$0xff]  ;;  %v601_v0 = vld [vmem:[%s2900_s7 + $0x1e8] sm:$0xff] }
  0xf7   :  { %v2331_v3 = vpop.f32.mrb[8].mxu0  ;;  %v1754_v5 = vpack.c.bf16 %v601_v0, %v600_v63 }
  0xf8   :  { %v2341_v7 = vpop.f32.mrb[9].mxu0  ;;  %v262_v8 = vadd.f32 %v261_v2, %v260_v1  ;;  %v265_v14 = vsel %vm247_vm2, %v2331_v3, 0.0  ;;  %v1751_v2 = vpack.c.bf16 %v583_v59, %v582_v58 }
  0xf9   :  { %v263_v11 = vsel %vm247_vm2, %v2341_v7, 0.0 }
  0xfa   :  { %v264_v12 = vadd.f32 %v263_v11, %v262_v8  ;;  %1735 = vmatpush3.bf16.xpose.msk.msra.mxu0 %vm2063_vm3, %v1733_v13  ;;  %v603_v11 = vld [vmem:[%s2900_s7 + $0x1f8] sm:$0xff]  ;;  %v1757_v13 = vpack.c.bf16 %v585_v9, %v584_v6 }
  0xfb   :  { %v2353_v15 = vpop.f32.mrb[10].mxu0  ;;  %1738 = vmatprep.subr.msk.bf16.mxu0 %vm2063_vm3, %v1736_v16 }
  0xfc   :  { %v2355_v17 = vpop.f32.mrb[11].mxu0  ;;  %v266_v18 = vadd.f32 %v265_v14, %v264_v12  ;;  %v269_v21 = vsel %vm247_vm2, %v2353_v15, 0.0  ;;  %v1760_v14 = vpack.c.bf16 %v603_v11, %v602_v10 }
  0xfd   :  { %v267_v19 = vsel %vm247_vm2, %v2355_v17, 0.0 }
  0xfe   :  { %v268_v20 = vadd.f32 %v267_v19, %v266_v18 }
  0xff   :  { %v2363_v22 = vpop.f32.mrb[12].mxu0 }
 0x100   :  { %v228_v26 = vpop.f32.mrb[13].mxu0  ;;  %v270_v27 = vadd.f32 %v269_v21, %v268_v20  ;;  %v273_v34 = vsel %vm247_vm2, %v2363_v22, 0.0 }
 0x101   :  { %v271_v30 = vsel %vm247_vm2, %v228_v26, 0.0 }
 0x102   :  { %v272_v32 = vadd.f32 %v271_v30, %v270_v27  ;;  %1741 = vmatpush3.bf16.xpose.msk.msra.mxu0 %vm2063_vm3, %v1739_v33 }
 0x103   :  { %v1636_v36 = vpop.f32.mrb[14].mxu0  ;;  %1744 = vmatprep.subr.msk.bf16.mxu0 %vm2063_vm3, %v1742_v37 }
 0x104   :  { %v238_v38 = vpop.f32.mrb[15].mxu0  ;;  %v274_v39 = vadd.f32 %v273_v34, %v272_v32  ;;  %v277_v44 = vsel %vm247_vm2, %v1636_v36, 0.0 }
 0x105   :  { %v275_v40 = vsel %vm247_vm2, %v238_v38, 0.0 }
 0x106   :  { %v276_v42 = vadd.f32 %v275_v40, %v274_v39 }
 0x108   :  { %v278_v48 = vadd.f32 %v277_v44, %v276_v42 }
 0x10a   :  { %v279_v53 = vrot.slane %v278_v48, 4  ;;  %1747 = vmatpush3.bf16.xpose.msk.msra.mxu0 %vm2063_vm3, %v1745_v54 }
 0x10b   :  { %1750 = vmatprep.subr.msk.bf16.mxu0 %vm2063_vm3, %v1748_v55 }
 0x10c   :  { %v280_v56 = vadd.f32 %v279_v53, %v278_v48 }
 0x10e   :  { %v281_v57 = vrot.slane %v280_v56, 2 }
 0x110   :  { %v282_v61 = vadd.f32 %v281_v57, %v280_v56 }
 0x112   :  { %v283_v1 = vrot.slane %v282_v61, 1  ;;  %1753 = vmatpush3.bf16.xpose.msk.msra.mxu0 %vm2063_vm3, %v1751_v2 }
 0x113   :  { %1756 = vmatprep.subr.msk.bf16.mxu0 %vm2063_vm3, %v1754_v5 }
 0x114   :  { %v284_v8 = vadd.f32 %v283_v1, %v282_v61 }
 0x116   :  { %v286_v12 = vmul.f32 0.0078125, %v284_v8 }
 0x118   :  { %v2433_v16 = vsub.f32 %v2271_v35, %v286_v12  ;;  %v2436_v18 = vsub.f32 %v2261_v31, %v286_v12  ;;  %v2439_v19 = vsub.f32 %v2285_v45, %v286_v12  ;;  %v2442_v20 = vsub.f32 %v2283_v43, %v286_v12 }
 0x119   :  { %v2445_v21 = vsub.f32 %v2309_v52, %v286_v12  ;;  %v2448_v23 = vsub.f32 %v2299_v49, %v286_v12  ;;  %v2451_v24 = vsub.f32 %v2323_v62, %v286_v12  ;;  %v2454_v35 = vsub.f32 %v2321_v60, %v286_v12 }
 0x11a   :  { %v2457_v31 = vsub.f32 %v2341_v7, %v286_v12  ;;  %v2460_v45 = vsub.f32 %v2331_v3, %v286_v12  ;;  %v2463_v43 = vsub.f32 %v2355_v17, %v286_v12  ;;  %v2466_v52 = vsub.f32 %v2353_v15, %v286_v12  ;;  %1759 = vmatpush3.bf16.xpose.msk.msra.mxu0 %vm2063_vm3, %v1757_v13  ;;  %v586_v15 = vld [vmem:[%s2900_s7 + $0x170] sm:$0xff] }
 0x11b   :  { %v2468_v49 = vsub.f32 %v228_v26, %v286_v12  ;;  %v2471_v62 = vsub.f32 %v2363_v22, %v286_v12  ;;  %v2473_v27 = vsub.f32 %v238_v38, %v286_v12  ;;  %v2475_v60 = vsub.f32 %v1636_v36, %v286_v12  ;;  %1762 = vmatprep.subr.msk.bf16.mxu0 %vm2063_vm3, %v1760_v14  ;;  %v587_v22 = vld [vmem:[%s2900_s7 + $0x178] sm:$0xff] }
 0x11c   :  { %v303_v7 = vmul.f32 %v2433_v16, %v2433_v16  ;;  %v304_v3 = vmul.f32 %v2436_v18, %v2436_v18  ;;  %v305_v17 = vmul.f32 %v2439_v19, %v2439_v19  ;;  %v306_v26 = vmul.f32 %v2442_v20, %v2442_v20 }
 0x11d   :  { %v307_v32 = vmul.f32 %v2445_v21, %v2445_v21  ;;  %v1763_v34 = vpack.c.bf16 %v587_v22, %v586_v15  ;;  %v308_v37 = vmul.f32 %v2448_v23, %v2448_v23  ;;  %v309_v40 = vmul.f32 %v2451_v24, %v2451_v24 }
 0x11e   :  { %v319_v28 = vsel %vm247_vm2, %v303_v7, 0.0  ;;  %v320_v29 = vsel %vm247_vm2, %v304_v3, 0.0  ;;  %v322_v33 = vsel %vm247_vm2, %v305_v17, 0.0  ;;  %v324_v38 = vsel %vm247_vm2, %v306_v26, 0.0 }
 0x11f   :  { %v321_v30 = vadd.f32 %v320_v29, %v319_v28  ;;  %v326_v42 = vsel %vm247_vm2, %v307_v32, 0.0  ;;  %v310_v46 = vmul.f32 %v2454_v35, %v2454_v35  ;;  %v328_v47 = vsel %vm247_vm2, %v308_v37, 0.0 }
 0x120   :  { %v311_v50 = vmul.f32 %v2457_v31, %v2457_v31  ;;  %v330_v51 = vsel %vm247_vm2, %v309_v40, 0.0  ;;  %v312_v54 = vmul.f32 %v2460_v45, %v2460_v45  ;;  %v313_v56 = vmul.f32 %v2463_v43, %v2463_v43  ;;  %v2556_v40 = vld [vmem:[%s2903_s2] ss:$0 sm:$0xff]  ;;  %s1963_s2 = smov 64  }
 0x121   :  { %v323_v36 = vadd.f32 %v322_v33, %v321_v30  ;;  %v332_v55 = vsel %vm247_vm2, %v310_v46, 0.0  ;;  %v314_v59 = vmul.f32 %v2466_v52, %v2466_v52  ;;  %v315_v0 = vmul.f32 %v2468_v49, %v2468_v49 }
 0x122   :  { %1765 = vmatpush3.bf16.xpose.msk.msra.mxu0 %vm2063_vm3, %v1763_v34  ;;  %v334_v57 = vsel %vm247_vm2, %v311_v50, 0.0  ;;  %v336_v61 = vsel %vm247_vm2, %v312_v54, 0.0  ;;  %v338_v1 = vsel %vm247_vm2, %v313_v56, 0.0  ;;  %v317_v8 = vmul.f32 %v2473_v27, %v2473_v27 }
 0x123   :  { %v325_v39 = vadd.f32 %v324_v38, %v323_v36  ;;  %v340_v5 = vsel %vm247_vm2, %v314_v59, 0.0  ;;  %v342_v9 = vsel %vm247_vm2, %v315_v0, 0.0  ;;  %v318_v11 = vmul.f32 %v2475_v60, %v2475_v60 }
 0x124   :  { %v346_v14 = vsel %vm247_vm2, %v317_v8, 0.0 }
 0x125   :  { %v327_v44 = vadd.f32 %v326_v42, %v325_v39  ;;  %v348_v3 = vsel %vm247_vm2, %v318_v11, 0.0 }
 0x127   :  { %v329_v48 = vadd.f32 %v328_v47, %v327_v44 }
 0x129   :  { %v331_v53 = vadd.f32 %v330_v51, %v329_v48  ;;  %1596 = vmatmul.mubr.msk.f32.vlgmr.msra.gmra.mrb[18].mxu0 %vm53_vm0, %v2281_v41  ;;  %v316_v41 = vmul.f32 %v2471_v62, %v2471_v62 }
 0x12b   :  { %v333_v25 = vadd.f32 %v332_v55, %v331_v53  ;;  %v344_v12 = vsel %vm247_vm2, %v316_v41, 0.0 }
 0x12d   :  { %v335_v58 = vadd.f32 %v334_v57, %v333_v25 }
 0x12f   :  { %v337_v63 = vadd.f32 %v336_v61, %v335_v58 }
 0x131   :  { %v339_v2 = vadd.f32 %v338_v1, %v337_v63 }
 0x133   :  { %v341_v6 = vadd.f32 %v340_v5, %v339_v2 }
 0x135   :  { %v343_v10 = vadd.f32 %v342_v9, %v341_v6 }
 0x137   :  { %v345_v13 = vadd.f32 %v344_v12, %v343_v10 }
 0x139   :  { %v347_v7 = vadd.f32 %v346_v14, %v345_v13 }
 0x13b   :  { %v349_v17 = vadd.f32 %v348_v3, %v347_v7 }
 0x13d   :  { %v350_v15 = vrot.slane %v349_v17, 4 }
 0x13f   :  { %v351_v22 = vadd.f32 %v350_v15, %v349_v17 }
 0x141   :  { %v352_v26 = vrot.slane %v351_v22, 2 }
 0x143   :  { %v353_v28 = vadd.f32 %v352_v26, %v351_v22 }
 0x145   :  { %v354_v29 = vrot.slane %v353_v28, 1 }
 0x147   :  { %v355_v30 = vadd.f32 %v354_v29, %v353_v28 }
 0x149   :  { %v356_v32 = vmul.f32 0.0078125, %v355_v30 }
 0x14b   :  { %v357_v33 = vadd.f32 1e-05, %v356_v32 }
 0x14d   :  { %1958 = vrsqrt.f32 %v357_v33 }
 0x157   :  { %v2539_v34 = vpop.eup %1958 }
 0x158   :  { %v2543_v36 = vmul.f32 %v2539_v34, %v2463_v43  ;;  %v2547_v37 = vmul.f32 %v2539_v34, %v2466_v52  ;;  %v371_v38 = vmul.f32 %v2539_v34, %v2468_v49  ;;  %v372_v39 = vmul.f32 %v2539_v34, %v2471_v62  ;;  %v2573_v62 = vld [vmem:[%s2904_s3] ss:$0 sm:$0xff]  ;;  %s1964_s3 = smov 32  }
 0x159   :  { %v2560_v42 = vmul.f32 %v2539_v34, %v2473_v27  ;;  %v2564_v43 = vmul.f32 %v2539_v34, %v2475_v60  ;;  %v360_v52 = vmul.f32 %v2539_v34, %v2436_v18  ;;  %v361_v49 = vmul.f32 %v2539_v34, %v2439_v19 }
 0x15a   :  { %v362_v44 = vmul.f32 %v2539_v34, %v2442_v20  ;;  %v359_v27 = vmul.f32 %v2539_v34, %v2433_v16  ;;  %v363_v19 = vmul.f32 %v2539_v34, %v2445_v21  ;;  %v364_v48 = vmul.f32 %v2539_v34, %v2448_v23 }
 0x15b   :  { %v383_v60 = vmul.f32 %v2556_v40, %v360_v52  ;;  %v384_v46 = vmul.f32 %v2556_v40, %v361_v49  ;;  %v365_v16 = vmul.f32 %v2539_v34, %v2451_v24  ;;  %v2596_v55 = vmul.f32 %v2556_v40, %v371_v38 }
 0x15c   :  { %v385_v18 = vmul.f32 %v2556_v40, %v362_v44  ;;  %v382_v47 = vmul.f32 %v2556_v40, %v359_v27  ;;  %v386_v53 = vmul.f32 %v2556_v40, %v363_v19  ;;  %v387_v21 = vmul.f32 %v2556_v40, %v364_v48 }
 0x15d   :  { %v406_v20 = vadd.f32 %v2573_v62, %v383_v60  ;;  %v407_v50 = vadd.f32 %v2573_v62, %v384_v46  ;;  %v388_v56 = vmul.f32 %v2556_v40, %v365_v16  ;;  %v2602_v61 = vmul.f32 %v2556_v40, %v372_v39 }
 0x15e   :  { %v408_v51 = vadd.f32 %v2573_v62, %v385_v18  ;;  %v405_v54 = vadd.f32 %v2573_v62, %v382_v47  ;;  %v409_v58 = vadd.f32 %v2573_v62, %v386_v53  ;;  %v410_v59 = vadd.f32 %v2573_v62, %v387_v21 }
 0x15f   :  { %v422_v23 = vmul.f32 0.2, %v406_v20  ;;  %v423_v25 = vmul.f32 0.2, %v407_v50  ;;  %v411_v1 = vadd.f32 %v2573_v62, %v388_v56  ;;  %v396_v60 = vmul.f32 %v2556_v40, %v2560_v42 }
 0x160   :  { %v424_v57 = vmul.f32 0.2, %v408_v51  ;;  %v421_v24 = vmul.f32 0.2, %v405_v54  ;;  %v425_v41 = vmul.f32 0.2, %v409_v58 }
 0x161   :  { %v2604_v63 = vmax.f32 %v406_v20, %v422_v23  ;;  %v2606_v0 = vmax.f32 %v407_v50, %v423_v25  ;;  %v426_v6 = vmul.f32 0.2, %v410_v59  ;;  %v427_v19 = vmul.f32 0.2, %v411_v1 }
 0x162   :  { %v2609_v2 = vmax.f32 %v408_v51, %v424_v57  ;;  %v2611_v5 = vmax.f32 %v405_v54, %v421_v24  ;;  %v2619_v14 = vmax.f32 %v409_v58, %v425_v41  ;;  %v2652_v54 = vmul.f32 %v2556_v40, %v2564_v43 }
 0x163   :  { %v1042_v8 = vrot.slane %v2604_v63, 2  ;;  %v1044_v9 = vrot.slane %v2606_v0, 2  ;;  %v960_v10 = vrot.slane %v2604_v63, 1  ;;  %v962_v11 = vrot.slane %v2606_v0, 1 }
 0x164   :  { %v1046_v12 = vrot.slane %v2609_v2, 2  ;;  %v964_v13 = vrot.slane %v2609_v2, 1  ;;  %v1041_v7 = vrot.slane %v2611_v5, 2  ;;  %v959_v15 = vrot.slane %v2611_v5, 1 }
 0x165   :  { %v1045_v3 = vsel %vm1040_vm4, %v1042_v8, %v1044_v9  ;;  %v963_v17 = vsel %vm958_vm5, %v960_v10, %v962_v11  ;;  %v1123_v22 = vrot.slane %v2611_v5, 3  ;;  %v1048_v30 = vrot.slane %v2619_v14, 2 }
 0x166   :  { %v1047_v26 = vsel %vm1040_vm4, %v1044_v9, %v1046_v12  ;;  %v965_v28 = vsel %vm958_vm5, %v962_v11, %v964_v13  ;;  %v1043_v29 = vsel %vm1040_vm4, %v1041_v7, %v1042_v8  ;;  %v961_v38 = vsel %vm958_vm5, %v959_v15, %v960_v10 }
 0x167   :  { %v1848_v32 = vpack.i.bf16 %v1047_v26, %v1045_v3  ;;  %v1838_v33 = vpack.i.bf16 %v965_v28, %v963_v17  ;;  %v966_v39 = vrot.slane %v2619_v14, 1  ;;  %v1049_v52 = vsel %vm1040_vm4, %v1046_v12, %v1048_v30 }
 0x168   :  { %v1124_v49 = vrot.slane %v2604_v63, 3  ;;  %v1128_v44 = vrot.slane %v2609_v2, 3  ;;  %v1130_v27 = vrot.slane %v2619_v14, 3  ;;  %v1126_v18 = vrot.slane %v2606_v0, 3 }
 0x169   :  { %1849 = vrot.lane.b32.xlu1 %v1848_v32, %s1963_s2  ;;  %1839 = vrot.lane.b32.xlu0 %v1838_v33, %s1964_s3  ;;  %v967_v46 = vsel %vm958_vm5, %v964_v13, %v966_v39  ;;  %v1853_v47 = vpack.i.bf16 %v1049_v52, %v1043_v29  ;;  %v2643_v50 = vmax.f32 %v410_v59, %v426_v6 }
 0x16a   :  { %v1843_v48 = vpack.i.bf16 %v967_v46, %v961_v38  ;;  %v1125_v20 = vsel %vm1122_vm6, %v1123_v22, %v1124_v49  ;;  %v1131_v16 = vsel %vm1122_vm6, %v1128_v44, %v1130_v27  ;;  %v1127_v42 = vsel %vm1122_vm6, %v1124_v49, %v1126_v18 }
 0x16b   :  { %v1129_v51 = vsel %vm1122_vm6, %v1126_v18, %v1128_v44  ;;  %v2648_v53 = vmax.f32 %v411_v1, %v427_v19  ;;  %v1050_v21 = vrot.slane %v2643_v50, 2  ;;  %v968_v23 = vrot.slane %v2643_v50, 1 }
 0x16c   :  { %v366_v25 = vmul.f32 %v2539_v34, %v2454_v35  ;;  %v367_v58 = vmul.f32 %v2539_v34, %v2457_v31  ;;  %v1132_v43 = vrot.slane %v2643_v50, 3  ;;  %v1863_v24 = vpack.i.bf16 %v1131_v16, %v1125_v20 }
 0x16d   :  { %1854 = vrot.lane.b32.xlu1 %v1853_v47, %s1963_s2  ;;  %1844 = vrot.lane.b32.xlu0 %v1843_v48, %s1964_s3  ;;  %v1052_v56 = vrot.slane %v2648_v53, 2  ;;  %v970_v57 = vrot.slane %v2648_v53, 1  ;;  %v1858_v59 = vpack.i.bf16 %v1129_v51, %v1127_v42  ;;  %v1134_v41 = vrot.slane %v2648_v53, 3 }
 0x16e   :  { %v389_v1 = vmul.f32 %v2556_v40, %v366_v25  ;;  %v1051_v35 = vsel %vm1040_vm4, %v1048_v30, %v1050_v21  ;;  %v969_v8 = vsel %vm958_vm5, %v966_v39, %v968_v23  ;;  %v390_v9 = vmul.f32 %v2556_v40, %v367_v58 }
 0x16f   :  { %v1053_v6 = vsel %vm1040_vm4, %v1050_v21, %v1052_v56  ;;  %v971_v10 = vsel %vm958_vm5, %v968_v23, %v970_v57  ;;  %v1133_v11 = vsel %vm1122_vm6, %v1130_v27, %v1132_v43  ;;  %v1135_v12 = vsel %vm1122_vm6, %v1132_v43, %v1134_v41 }
 0x170   :  { %v412_v31 = vadd.f32 %v2573_v62, %v389_v1  ;;  %v419_v13 = vadd.f32 %v2573_v62, %v396_v60  ;;  %v413_v7 = vadd.f32 %v2573_v62, %v390_v9  ;;  %v368_v3 = vmul.f32 %v2539_v34, %v2460_v45 }
 0x171   :  { %1864 = vrot.lane.b32.xlu1 %v1863_v24, %s1965_s15  ;;  %1859 = vrot.lane.b32.xlu0 %v1858_v59, %s1965_s15  ;;  %v1873_v17 = vpack.i.bf16 %v1053_v6, %v1051_v35  ;;  %v392_v22 = vmul.f32 %v2556_v40, %v2543_v36  ;;  %v393_v26 = vmul.f32 %v2556_v40, %v2547_v37 }
 0x172   :  { %v428_v15 = vmul.f32 0.2, %v412_v31  ;;  %v1868_v28 = vpack.i.bf16 %v971_v10, %v969_v8  ;;  %v429_v29 = vmul.f32 0.2, %v413_v7  ;;  %v1878_v30 = vpack.i.bf16 %v1135_v12, %v1133_v11 }
 0x173   :  { %v391_v32 = vmul.f32 %v2556_v40, %v368_v3  ;;  %v415_v38 = vadd.f32 %v2573_v62, %v392_v22  ;;  %v417_v45 = vadd.f32 %v2573_v62, %v2596_v55  ;;  %v418_v34 = vadd.f32 %v2573_v62, %v2602_v61 }
 0x174   :  { %v2686_v33 = vmax.f32 %v412_v31, %v428_v15  ;;  %v435_v39 = vmul.f32 0.2, %v419_v13  ;;  %v2695_v36 = vmax.f32 %v413_v7, %v429_v29  ;;  %v416_v40 = vadd.f32 %v2573_v62, %v393_v26 }
 0x175   :  { %1874 = vrot.lane.b32.xlu1 %v1873_v17, %s1963_s2  ;;  %1869 = vrot.lane.b32.xlu0 %v1868_v28, %s1964_s3  ;;  %v414_v37 = vadd.f32 %v2573_v62, %v391_v32  ;;  %v431_v44 = vmul.f32 0.2, %v415_v38  ;;  %v433_v48 = vmul.f32 0.2, %v417_v45  ;;  %v434_v35 = vmul.f32 0.2, %v418_v34 }
 0x176   :  { %v972_v52 = vrot.slane %v2686_v33, 1  ;;  %v1136_v49 = vrot.slane %v2686_v33, 3  ;;  %v1054_v55 = vrot.slane %v2686_v33, 2  ;;  %v974_v61 = vrot.slane %v2695_v36, 1 }
 0x177   :  { %v1138_v27 = vrot.slane %v2695_v36, 3  ;;  %v1056_v60 = vrot.slane %v2695_v36, 2  ;;  %v430_v46 = vmul.f32 0.2, %v414_v37  ;;  %v2707_v47 = vmax.f32 %v415_v38, %v431_v44 }
 0x178   :  { %v973_v18 = vsel %vm958_vm5, %v970_v57, %v972_v52  ;;  %v1055_v19 = vsel %vm1040_vm4, %v1052_v56, %v1054_v55  ;;  %v975_v20 = vsel %vm958_vm5, %v972_v52, %v974_v61  ;;  %v1137_v16 = vsel %vm1122_vm6, %v1134_v41, %v1136_v49 }
 0x179   :  { %1879 = vrot.lane.b32.xlu0 %v1878_v30, %s1965_s15  ;;  %v1057_v42 = vsel %vm1040_vm4, %v1054_v55, %v1056_v60  ;;  %v2713_v51 = vmax.f32 %v414_v37, %v430_v46  ;;  %v1883_v21 = vpack.i.bf16 %v975_v20, %v973_v18  ;;  %v1139_v23 = vsel %vm1122_vm6, %v1136_v49, %v1138_v27 }
 0x17a   :  { %v1888_v25 = vpack.i.bf16 %v1057_v42, %v1055_v19  ;;  %v1060_v57 = vrot.slane %v2707_v47, 2  ;;  %v978_v43 = vrot.slane %v2707_v47, 1  ;;  %v432_v24 = vmul.f32 0.2, %v416_v40 }
 0x17b   :  { %v1058_v56 = vrot.slane %v2713_v51, 2  ;;  %v976_v58 = vrot.slane %v2713_v51, 1  ;;  %1884 = vrot.lane.b32.xlu1 %v1883_v21, %s1964_s3  ;;  %v2721_v59 = vmax.f32 %v417_v45, %v433_v48  ;;  %v1140_v1 = vrot.slane %v2713_v51, 3 }
 0x17c   :  { %v1142_v41 = vrot.slane %v2707_v47, 3  ;;  %v2725_v6 = vmax.f32 %v419_v13, %v435_v39  ;;  %v420_v10 = vadd.f32 %v2573_v62, %v2652_v54  ;;  %v1893_v31 = vpack.i.bf16 %v1139_v23, %v1137_v16 }
 0x17d   :  { %1889 = vrot.lane.b32.xlu0 %v1888_v25, %s1963_s2  ;;  %v977_v8 = vsel %vm958_vm5, %v974_v61, %v976_v58  ;;  %v979_v9 = vsel %vm958_vm5, %v976_v58, %v978_v43  ;;  %v1059_v11 = vsel %vm1040_vm4, %v1056_v60, %v1058_v56  ;;  %v1061_v12 = vsel %vm1040_vm4, %v1058_v56, %v1060_v57 }
 0x17e   :  { %v2734_v7 = vmax.f32 %v416_v40, %v432_v24  ;;  %v1898_v3 = vpack.i.bf16 %v979_v9, %v977_v8  ;;  %v982_v13 = vrot.slane %v2721_v59, 1  ;;  %v1141_v17 = vsel %vm1122_vm6, %v1138_v27, %v1140_v1 }
 0x17f   :  { %v1143_v15 = vsel %vm1122_vm6, %v1140_v1, %v1142_v41  ;;  %1894 = vrot.lane.b32.xlu1 %v1893_v31, %s1965_s15  ;;  %v1064_v54 = vrot.slane %v2721_v59, 2  ;;  %v2743_v26 = vmax.f32 %v418_v34, %v434_v35  ;;  %v1903_v28 = vpack.i.bf16 %v1061_v12, %v1059_v11 }
 0x180   :  { %v980_v22 = vrot.slane %v2734_v7, 1  ;;  %v1062_v62 = vrot.slane %v2734_v7, 2  ;;  %v1908_v29 = vpack.i.bf16 %v1143_v15, %v1141_v17  ;;  %v1146_v30 = vrot.slane %v2721_v59, 3 }
 0x181   :  { %1899 = vrot.lane.b32.xlu0 %v1898_v3, %s1964_s3  ;;  %v1144_v45 = vrot.slane %v2734_v7, 3  ;;  %v436_v39 = vmul.f32 0.2, %v420_v10  ;;  %v984_v40 = vrot.slane %v2743_v26, 1  ;;  %v986_v52 = vrot.slane %v2725_v6, 1 }
 0x182   :  { %v981_v32 = vsel %vm958_vm5, %v978_v43, %v980_v22  ;;  %v983_v38 = vsel %vm958_vm5, %v980_v22, %v982_v13  ;;  %v1063_v37 = vsel %vm1040_vm4, %v1060_v57, %v1062_v62  ;;  %v1065_v34 = vsel %vm1040_vm4, %v1062_v62, %v1064_v54 }
 0x183   :  { %1904 = vrot.lane.b32.xlu1 %v1903_v28, %s1963_s2  ;;  %v1913_v49 = vpack.i.bf16 %v983_v38, %v981_v32  ;;  %v1066_v55 = vrot.slane %v2743_v26, 2  ;;  %v1068_v44 = vrot.slane %v2725_v6, 2  ;;  %v1145_v61 = vsel %vm1122_vm6, %v1142_v41, %v1144_v45 }
 0x184   :  { %v1147_v27 = vsel %vm1122_vm6, %v1144_v45, %v1146_v30  ;;  %v1918_v60 = vpack.i.bf16 %v1065_v34, %v1063_v37  ;;  %v2760_v46 = vmax.f32 %v420_v10, %v436_v39  ;;  %v985_v18 = vsel %vm958_vm5, %v982_v13, %v984_v40 }
 0x185   :  { %1909 = vrot.lane.b32.xlu0 %v1908_v29, %s1965_s15  ;;  %v987_v19 = vsel %vm958_vm5, %v984_v40, %v986_v52  ;;  %v990_v48 = vrot.slane %v1962_v4, 1  ;;  %v1923_v20 = vpack.i.bf16 %v1147_v27, %v1145_v61  ;;  %v1067_v16 = vsel %vm1040_vm4, %v1064_v54, %v1066_v55 }
 0x186   :  { %v1069_v42 = vsel %vm1040_vm4, %v1066_v55, %v1068_v44  ;;  %v1928_v21 = vpack.i.bf16 %v987_v19, %v985_v18  ;;  %v988_v23 = vrot.slane %v2760_v46, 1  ;;  %v1148_v25 = vrot.slane %v2743_v26, 3 }
 0x187   :  { %1914 = vrot.lane.b32.xlu1 %v1913_v49, %s1964_s3  ;;  %v1933_v57 = vpack.i.bf16 %v1069_v42, %v1067_v16  ;;  %v1150_v43 = vrot.slane %v2725_v6, 3  ;;  %v1152_v24 = vrot.slane %v2760_v46, 3  ;;  %v1070_v41 = vrot.slane %v2760_v46, 2 }
 0x188   :  { %v989_v56 = vsel %vm958_vm5, %v986_v52, %v988_v23  ;;  %v991_v58 = vsel %vm958_vm5, %v988_v23, %v990_v48  ;;  %v1149_v1 = vsel %vm1122_vm6, %v1146_v30, %v1148_v25  ;;  %v1072_v10 = vrot.slane %v1962_v4, 2 }
 0x189   :  { %1919 = vrot.lane.b32.xlu0 %v1918_v60, %s1963_s2  ;;  %v1938_v35 = vpack.i.bf16 %v991_v58, %v989_v56  ;;  %v1151_v8 = vsel %vm1122_vm6, %v1148_v25, %v1150_v43  ;;  %v1153_v9 = vsel %vm1122_vm6, %v1150_v43, %v1152_v24  ;;  %v1071_v31 = vsel %vm1040_vm4, %v1068_v44, %v1070_v41 }
 0x18a   :  { %v1154_v11 = vrot.slane %v1962_v4, 3  ;;  %v1943_v12 = vpack.i.bf16 %v1153_v9, %v1151_v8  ;;  %v1073_v3 = vsel %vm1040_vm4, %v1070_v41, %v1072_v10 }
 0x18b   :  { %1924 = vrot.lane.b32.xlu1 %v1923_v20, %s1965_s15  ;;  %v1948_v17 = vpack.i.bf16 %v1072_v10, %v1073_v3 }
 0x18c   :  { %v1155_v13 = vsel %vm1122_vm6, %v1152_v24, %v1154_v11 }
 0x18d   :  { %1929 = vrot.lane.b32.xlu0 %v1928_v21, %s1964_s3  ;;  %v1953_v15 = vpack.i.bf16 %v1154_v11, %v1155_v13 }
 0x18f   :  { %1934 = vrot.lane.b32.xlu1 %v1933_v57, %s1963_s2 }
 0x191   :  { %1180 = vrot.lane.b32.xlu0 %v1149_v1, %s1965_s15 }
 0x193   :  { %1939 = vrot.lane.b32.xlu1 %v1938_v35, %s1964_s3 }
 0x195   :  { %1102 = vrot.lane.b32.xlu0 %v1071_v31, %s1963_s2 }
 0x197   :  { %1944 = vrot.lane.b32.xlu1 %v1943_v12, %s1965_s15 }
 0x199   :  { %1205 = vrot.lane.b32.xlu0 %v990_v48, %s1964_s3 }
 0x19b   :  { %1949 = vrot.lane.b32.xlu1 %v1948_v17, %s1963_s2 }
 0x19d   :  { %1954 = vrot.lane.b32.xlu0 %v1953_v15, %s1965_s15 }
 0x1bc   :  { %v2794_v22 = vpop.f32.mrb[16].mxu0 }
 0x1bd   :  { %v867_v4 = vpop.f32.mrb[17].mxu0 }
 0x1be   :  { %1332 = vmatprep.mubr.f32.mxu1 %v867_v4 }
 0x1db   :  { %v1850_v62 = vpop.permute.xlu1 %1849  ;;  %v1840_v54 = vpop.permute.xlu0 %1839 }
 0x1dc   :  { %v1842_v28 = vunpack.i.h.bf16 %v1840_v54  ;;  %v1841_v29 = vunpack.i.l.bf16 %v1840_v54  ;;  %v1852_v45 = vunpack.i.h.bf16 %v1850_v62  ;;  %v1851_v39 = vunpack.i.l.bf16 %v1850_v62 }
 0x1de   :  { %v1218_v34 = vsel %vm247_vm2, %v2606_v0, %v1842_v28  ;;  %v1217_v40 = vsel %vm247_vm2, %v2604_v63, %v1841_v29 }
 0x1df   :  { %v1855_v30 = vpop.permute.xlu1 %1854  ;;  %v1845_v32 = vpop.permute.xlu0 %1844  ;;  %v1233_v19 = vsel %vm53_vm0, %v1217_v40, %v1851_v39  ;;  %v1234_v48 = vsel %vm53_vm0, %v1218_v34, %v1852_v45 }
 0x1e0   :  { %v1846_v38 = vunpack.i.l.bf16 %v1845_v32  ;;  %v1856_v37 = vunpack.i.l.bf16 %v1855_v30  ;;  %v1847_v60 = vunpack.i.h.bf16 %v1845_v32  ;;  %v1857_v23 = vunpack.i.h.bf16 %v1855_v30 }
 0x1e2   :  { %v1216_v52 = vsel %vm247_vm2, %v2611_v5, %v1846_v38  ;;  %v1219_v57 = vsel %vm247_vm2, %v2609_v2, %v1847_v60 }
 0x1e3   :  { %v1865_v49 = vpop.permute.xlu1 %1864  ;;  %v1860_v55 = vpop.permute.xlu0 %1859  ;;  %v1232_v18 = vsel %vm53_vm0, %v1216_v52, %v1856_v37  ;;  %v1235_v41 = vsel %vm53_vm0, %v1219_v57, %v1857_v23 }
 0x1e4   :  { %v1866_v44 = vunpack.i.l.bf16 %v1865_v49  ;;  %v1862_v61 = vunpack.i.h.bf16 %v1860_v55  ;;  %v1861_v27 = vunpack.i.l.bf16 %v1860_v55  ;;  %v1867_v56 = vunpack.i.h.bf16 %v1865_v49 }
 0x1e6   :  { %v1249_v0 = vsel %vm1248_vm7, %v1232_v18, %v1866_v44  ;;  %v1250_v63 = vsel %vm1248_vm7, %v1233_v19, %v1861_v27  ;;  %v1251_v20 = vsel %vm1248_vm7, %v1234_v48, %v1862_v61  ;;  %v1252_v9 = vsel %vm1248_vm7, %v1235_v41, %v1867_v56 }
 0x1e7   :  { %v1875_v5 = vpop.permute.xlu1 %1874  ;;  %v1870_v16 = vpop.permute.xlu0 %1869  ;;  %v1766_v42 = vpack.c.bf16 %v1251_v20, %v1250_v63  ;;  %v1768_v21 = vpack.c.bf16 %v1250_v63, %v1249_v0 }
 0x1e8   :  { %v1871_v25 = vunpack.i.l.bf16 %v1870_v16  ;;  %v1876_v58 = vunpack.i.l.bf16 %v1875_v5  ;;  %v1872_v35 = vunpack.i.h.bf16 %v1870_v16  ;;  %v1877_v3 = vunpack.i.h.bf16 %v1875_v5 }
 0x1e9   :  { %1767 = vmatprep.subr.bf16.mxu1 %v1766_v42 }
 0x1ea   :  { %v1220_v43 = vsel %vm247_vm2, %v2619_v14, %v1871_v25  ;;  %1769 = vmatpush1.bf16.xpose.msra.mxu1 %v1768_v21  ;;  %v2818_v14 = vpack.c.bf16 %v1252_v9, %v1251_v20  ;;  %v1221_v17 = vsel %vm247_vm2, %v2643_v50, %v1872_v35 }
 0x1eb   :  { %v1880_v24 = vpop.permute.xlu0 %1879  ;;  %v1236_v8 = vsel %vm53_vm0, %v1220_v43, %v1876_v58  ;;  %v1237_v45 = vsel %vm53_vm0, %v1221_v17, %v1877_v3 }
 0x1ec   :  { %v1881_v1 = vunpack.i.l.bf16 %v1880_v24  ;;  %v1882_v4 = vunpack.i.h.bf16 %v1880_v24 }
 0x1ed   :  { %v1885_v10 = vpop.permute.xlu1 %1884 }
 0x1ee   :  { %v1253_v31 = vsel %vm1248_vm7, %v1236_v8, %v1881_v1  ;;  %v1886_v2 = vunpack.i.l.bf16 %v1885_v10  ;;  %v1887_v62 = vunpack.i.h.bf16 %v1885_v10  ;;  %v1254_v50 = vsel %vm1248_vm7, %v1237_v45, %v1882_v4 }
 0x1ef   :  { %v1890_v11 = vpop.permute.xlu0 %1889  ;;  %v2816_v12 = vpack.c.bf16 %v1253_v31, %v1252_v9  ;;  %v2838_v61 = vpack.c.bf16 %v1254_v50, %v1253_v31 }
 0x1f0   :  { %v1891_v13 = vunpack.i.l.bf16 %v1890_v11  ;;  %v1222_v15 = vsel %vm247_vm2, %v2648_v53, %v1886_v2  ;;  %v1892_v30 = vunpack.i.h.bf16 %v1890_v11  ;;  %v1223_v53 = vsel %vm247_vm2, %v2686_v33, %v1887_v62 }
 0x1f1   :  { %1771 = vmatprep.subr.bf16.mxu1 %v2816_v12  ;;  %v1895_v54 = vpop.permute.xlu1 %1894 }
 0x1f2   :  { %v1238_v28 = vsel %vm53_vm0, %v1222_v15, %v1891_v13  ;;  %1773 = vmatpush1.bf16.xpose.msra.mxu1 %v2818_v14  ;;  %v1896_v29 = vunpack.i.l.bf16 %v1895_v54  ;;  %v1897_v37 = vunpack.i.h.bf16 %v1895_v54  ;;  %v1239_v49 = vsel %vm53_vm0, %v1223_v53, %v1892_v30 }
 0x1f3   :  { %v1900_v32 = vpop.permute.xlu0 %1899 }
 0x1f4   :  { %v1901_v38 = vunpack.i.l.bf16 %v1900_v32  ;;  %v1255_v39 = vsel %vm1248_vm7, %v1238_v28, %v1896_v29  ;;  %v1902_v60 = vunpack.i.h.bf16 %v1900_v32  ;;  %v1256_v19 = vsel %vm1248_vm7, %v1239_v49, %v1897_v37 }
 0x1f5   :  { %v1905_v34 = vpop.permute.xlu1 %1904  ;;  %v2834_v52 = vpack.c.bf16 %v1255_v39, %v1254_v50  ;;  %v2856_v1 = vpack.c.bf16 %v1256_v19, %v1255_v39 }
 0x1f6   :  { %v1224_v40 = vsel %vm247_vm2, %v2695_v36, %v1901_v38  ;;  %v1906_v55 = vunpack.i.l.bf16 %v1905_v34  ;;  %v1907_v20 = vunpack.i.h.bf16 %v1905_v34  ;;  %v1225_v16 = vsel %vm247_vm2, %v2713_v51, %v1902_v60 }
 0x1f7   :  { %v1910_v44 = vpop.permute.xlu0 %1909  ;;  %1775 = vmatprep.subr.bf16.mxu1 %v2834_v52 }
 0x1f8   :  { %v1911_v27 = vunpack.i.l.bf16 %v1910_v44  ;;  %v1240_v18 = vsel %vm53_vm0, %v1224_v40, %v1906_v55  ;;  %v1912_v21 = vunpack.i.h.bf16 %v1910_v44  ;;  %v1241_v51 = vsel %vm53_vm0, %v1225_v16, %v1907_v20 }
 0x1f9   :  { %v1915_v33 = vpop.permute.xlu1 %1914 }
 0x1fa   :  { %1777 = vmatpush1.bf16.xpose.msra.mxu1 %v2838_v61  ;;  %v1257_v36 = vsel %vm1248_vm7, %v1240_v18, %v1911_v27  ;;  %v1916_v48 = vunpack.i.l.bf16 %v1915_v33  ;;  %v1917_v24 = vunpack.i.h.bf16 %v1915_v33  ;;  %v1258_v8 = vsel %vm1248_vm7, %v1241_v51, %v1912_v21 }
 0x1fb   :  { %v1920_v0 = vpop.permute.xlu0 %1919  ;;  %v2844_v63 = vpack.c.bf16 %v1257_v36, %v1256_v19  ;;  %v1784_v30 = vpack.c.bf16 %v1258_v8, %v1257_v36 }
 0x1fc   :  { %v1921_v5 = vunpack.i.l.bf16 %v1920_v0  ;;  %v1226_v42 = vsel %vm247_vm2, %v2707_v47, %v1916_v48  ;;  %v2852_v57 = vpop.f32.mrb[18].mxu0  ;;  %v1922_v35 = vunpack.i.h.bf16 %v1920_v0  ;;  %v1227_v3 = vsel %vm247_vm2, %v2734_v7, %v1917_v24 }
 0x1fd   :  { %1779 = vmatprep.subr.bf16.mxu1 %v2844_v63  ;;  %v1925_v23 = vpop.permute.xlu1 %1924  ;;  %v2854_v43 = vpop.f32.mrb[19].mxu0 }
 0x1fe   :  { %v1242_v25 = vsel %vm53_vm0, %v1226_v42, %v1921_v5  ;;  %v1926_v56 = vunpack.i.l.bf16 %v1925_v23  ;;  %v1927_v13 = vunpack.i.h.bf16 %v1925_v23  ;;  %v1243_v17 = vsel %vm53_vm0, %v1227_v3, %v1922_v35 }
 0x1ff   :  { %v1930_v58 = vpop.permute.xlu0 %1929 }
 0x200   :  { %v1931_v41 = vunpack.i.l.bf16 %v1930_v58  ;;  %v1259_v47 = vsel %vm1248_vm7, %v1242_v25, %v1926_v56  ;;  %v1932_v4 = vunpack.i.h.bf16 %v1930_v58 }
 0x201   :  { %v1935_v9 = vpop.permute.xlu1 %1934  ;;  %v1782_v31 = vpack.c.bf16 %v1259_v47, %v1258_v8 }
 0x202   :  { %1781 = vmatpush1.bf16.xpose.msra.mxu1 %v2856_v1  ;;  %v1228_v10 = vsel %vm247_vm2, %v2721_v59, %v1931_v41  ;;  %v1936_v2 = vunpack.i.l.bf16 %v1935_v9  ;;  %v1260_v59 = vsel %vm1248_vm7, %v1243_v17, %v1927_v13  ;;  %v1937_v32 = vunpack.i.h.bf16 %v1935_v9 }
 0x203   :  { %v1181_v11 = vpop.permute.xlu0 %1180  ;;  %1783 = vmatprep.subr.bf16.mxu1 %v1782_v31  ;;  %v1229_v45 = vsel %vm247_vm2, %v2743_v26, %v1932_v4  ;;  %v1788_v60 = vpack.c.bf16 %v1260_v59, %v1259_v47 }
 0x204   :  { %v1244_v15 = vsel %vm53_vm0, %v1228_v10, %v1936_v2  ;;  %v1245_v40 = vsel %vm53_vm0, %v1229_v45, %v1937_v32 }
 0x205   :  { %v1940_v62 = vpop.permute.xlu1 %1939  ;;  %v1261_v54 = vsel %vm1248_vm7, %v1244_v15, %v1181_v11 }
 0x206   :  { %v1941_v28 = vunpack.i.l.bf16 %v1940_v62  ;;  %v1786_v38 = vpack.c.bf16 %v1261_v54, %v1260_v59 }
 0x207   :  { %v1103_v29 = vpop.permute.xlu0 %1102 }
 0x208   :  { %v1230_v7 = vsel %vm247_vm2, %v2725_v6, %v1941_v28  ;;  %v1942_v6 = vunpack.i.h.bf16 %v1940_v62 }
 0x209   :  { %v1945_v50 = vpop.permute.xlu1 %1944  ;;  %v1246_v37 = vsel %vm53_vm0, %v1230_v7, %v1103_v29 }
 0x20a   :  { %1785 = vmatpush1.bf16.xpose.msra.mxu1 %v1784_v30  ;;  %v1947_v39 = vunpack.i.h.bf16 %v1945_v50  ;;  %v1946_v53 = vunpack.i.l.bf16 %v1945_v50  ;;  %v1231_v0 = vsel %vm247_vm2, %v2760_v46, %v1942_v6 }
 0x20b   :  { %v1206_v34 = vpop.permute.xlu0 %1205  ;;  %1787 = vmatprep.subr.bf16.mxu1 %v1786_v38 }
 0x20c   :  { %v1263_v49 = vsel %vm1248_vm7, %v1246_v37, %v1947_v39  ;;  %v1262_v44 = vsel %vm1248_vm7, %v1245_v40, %v1946_v53  ;;  %v1265_v19 = vsel %vm247_vm2, 0.0, %v1206_v34 }
 0x20d   :  { %v1950_v55 = vpop.permute.xlu1 %1949  ;;  %v1790_v33 = vpack.c.bf16 %v1263_v49, %v1262_v44  ;;  %v1792_v21 = vpack.c.bf16 %v1262_v44, %v1261_v54 }
 0x20e   :  { %v1952_v18 = vunpack.i.h.bf16 %v1950_v55  ;;  %v1951_v26 = vunpack.i.l.bf16 %v1950_v55 }
 0x20f   :  { %v1955_v27 = vpop.permute.xlu0 %1954 }
 0x210   :  { %v1957_v36 = vunpack.i.h.bf16 %v1955_v27  ;;  %v1956_v48 = vunpack.i.l.bf16 %v1955_v27  ;;  %v1247_v20 = vsel %vm53_vm0, %v1231_v0, %v1951_v26  ;;  %v1266_v5 = vsel %vm53_vm0, %v1265_v19, %v1952_v18 }
 0x212   :  { %1789 = vmatpush1.bf16.xpose.msra.mxu1 %v1788_v60  ;;  %v1264_v16 = vsel %vm1248_vm7, %v1247_v20, %v1956_v48  ;;  %v1267_v42 = vsel %vm1248_vm7, %v1266_v5, %v1957_v36 }
 0x213   :  { %1791 = vmatprep.subr.bf16.mxu1 %v1790_v33  ;;  %v1794_v23 = vpack.c.bf16 %v1267_v42, %v1264_v16  ;;  %v1796_v25 = vpack.c.bf16 %v1264_v16, %v1263_v49  ;;  %v1826_v46 = vpack.c.bf16 %v1267_v42, %v1267_v42 }
 0x21a   :  { %1793 = vmatpush1.bf16.xpose.msra.mxu1 %v1792_v21 }
 0x21b   :  { %1795 = vmatprep.subr.bf16.mxu1 %v1794_v23 }
 0x222   :  { %1797 = vmatpush1.bf16.xpose.msra.mxu1 %v1796_v25 }
 0x223   :  { %1799 = vmatprep.subr.bf16.mxu1 %v2816_v12 }
 0x229   :  { %1333 = vmatmul.mubr.f32.vlgmr.msra.gmra.mrb[2].mxu1 %v2794_v22 }
 0x22a   :  { %1801 = vmatpush1.bf16.xpose.msra.mxu1 %v2818_v14  ;;  %1402 = vmatprep.mubr.f32.mxu1 %v2854_v43 }
 0x22b   :  { %1803 = vmatprep.subr.bf16.mxu1 %v2834_v52 }
 0x232   :  { %1805 = vmatpush1.bf16.xpose.msra.mxu1 %v2838_v61 }
 0x233   :  { %1807 = vmatprep.subr.bf16.mxu1 %v2844_v63 }
 0x23a   :  { %1809 = vmatpush1.bf16.xpose.msra.mxu1 %v2856_v1 }
 0x23b   :  { %1811 = vmatprep.subr.bf16.mxu1 %v1782_v31 }
 0x242   :  { %1813 = vmatpush1.bf16.xpose.msra.mxu1 %v1784_v30 }
 0x243   :  { %1815 = vmatprep.subr.bf16.mxu1 %v1786_v38 }
 0x24a   :  { %1817 = vmatpush1.bf16.xpose.msra.mxu1 %v1788_v60 }
 0x24b   :  { %1819 = vmatprep.subr.bf16.mxu1 %v1790_v33 }
 0x252   :  { %1821 = vmatpush1.bf16.xpose.msra.mxu1 %v1792_v21 }
 0x253   :  { %1823 = vmatprep.subr.bf16.mxu1 %v1794_v23 }
 0x25a   :  { %1825 = vmatpush1.bf16.xpose.msra.mxu1 %v1796_v25 }
 0x25b   :  { %1827 = vmatprep.subr.bf16.mxu1 %v1826_v46 }
 0x262   :  { %1829 = vmatpush1.bf16.xpose.msra.mxu1 %v1826_v46 }
 0x269   :  { %1403 = vmatmul.mubr.f32.vlgmr.msra.gmra.mrb[2].mxu1 %v2852_v57 }
 0x33c   :  { %v1404_v22 = vpop.f32.mrb[2].mxu1 }
 0x33d   :  { %v1408_v12 = vmul.f32 0.125, %v1404_v22  ;;  %v1406_v14 = vpop.f32.mrb[3].mxu1 }
 0x33f   :  { %1409 = vst [vmem:[%s2905_s8] sm:$0x3] %v1408_v12 }

</bundles_post_ra>
